<compile_context>
chip_gen: v7x
topology: tpu7x:2x2x1
jax: 0.10.0
libtpu: 0.0.40
codegen_flags: <defaults>
</compile_context>

<pallas_src>
import jax
import jax.numpy as jnp
from jax import lax
from jax.experimental import pallas as pl
from jax.experimental.pallas import tpu as pltpu


def _spectral_mul_kernel(ar_ref, ai_ref, wr_ref, wi_ref, or_ref, oi_ref):
    # ar/ai: (Cin, B, TM)   wr/wi: (Cin, Cout, TM)   or/oi: (B, Cout, TM)
    cin = wr_ref.shape[0]
    b = ar_ref.shape[1]
    cout = wr_ref.shape[1]
    tm = or_ref.shape[-1]

    def body(i, carry):
        acc_r, acc_i = carry
        a_r = ar_ref[i]                       # (B, TM)
        a_i = ai_ref[i]
        w_r = wr_ref[i]                       # (Cout, TM)
        w_i = wi_ref[i]
        # Gauss / Karatsuba 3-multiply complex product, broadcast over (B, Cout, TM).
        # Cheap (B,TM)/(Cout,TM) pre-sums; only 3 full-size (B,Cout,TM) multiplies.
        k1 = (a_r + a_i)[:, None, :] * w_r[None, :, :]
        k2 = a_r[:, None, :] * (w_i - w_r)[None, :, :]
        k3 = a_i[:, None, :] * (w_r + w_i)[None, :, :]
        return acc_r + (k1 - k3), acc_i + (k1 + k2)

    zeros = jnp.zeros((b, cout, tm), jnp.float32)
    acc_r, acc_i = lax.fori_loop(0, cin, body, (zeros, zeros), unroll=True)
    or_ref[...] = acc_r
    oi_ref[...] = acc_i


def _choose_tile(M, B, Cin, Cout, tile_m=512):
    """Pick a lane-dense mode tile that fits VMEM (incl. v7x) and keeps the grid >= 4 steps."""
    # bytes of one mode "column" across all six planar f32 blocks (re+im of a, w, out)
    bytes_per_mode = 4 * 2 * (Cin * B + Cin * Cout + B * Cout)
    budget = 40 * 2 ** 20          # double-buffered tiles must fit v7x's 64 MiB VMEM
    if M <= tile_m and 2 * M * bytes_per_mode <= budget:
        return M, M                # single full-extent tile (no 128-divisibility needed)
    tm = max(128, (min(tile_m, M) // 128) * 128)
    while tm > 128 and 2 * tm * bytes_per_mode > budget:
        tm -= 128
    # keep >= 4 grid steps so v7x's 2 TensorCores each get >= 2 steps (no effect on v5e/v6e)
    while tm > 128 and pl.cdiv(M, tm) < 4:
        tm -= 128
    return tm, pl.cdiv(M, tm) * tm


def spectral_modes_matmul(ar, ai, wr, wi, *, tile_m=512):
    """ar/ai: f32 (Cin, B, M); wr/wi: f32 (Cin, Cout, M) -> (out_r, out_i) f32 (B, Cout, M)."""
    Cin, B, M = ar.shape
    Cout = wr.shape[1]
    tm, M_pad = _choose_tile(M, B, Cin, Cout, tile_m)
    if M_pad != M:
        pad = ((0, 0), (0, 0), (0, M_pad - M))
        ar, ai, wr, wi = (jnp.pad(t, pad) for t in (ar, ai, wr, wi))

    # NOTE: for small channel counts (Cin/Cout < 8) the second-minor dim underfills sublanes;
    # fine at toy sizes, and already dense at production FNO widths (>= 8 channels).
    a_spec = pl.BlockSpec((Cin, B, tm), lambda m: (0, 0, m))
    w_spec = pl.BlockSpec((Cin, Cout, tm), lambda m: (0, 0, m))
    o_spec = pl.BlockSpec((B, Cout, tm), lambda m: (0, 0, m))

    bytes_per_mode = 4 * 2 * (Cin * B + Cin * Cout + B * Cout)
    vmem_limit = int(min(48 * 2 ** 20, max(3 * tm * bytes_per_mode, 32 * 2 ** 20)))
    cost = pl.CostEstimate(
        flops=8 * B * Cin * Cout * M_pad,
        transcendentals=0,
        bytes_accessed=bytes_per_mode * M_pad,
    )

    out_r, out_i = pl.pallas_call(
        _spectral_mul_kernel,
        out_shape=(jax.ShapeDtypeStruct((B, Cout, M_pad), jnp.float32),
                   jax.ShapeDtypeStruct((B, Cout, M_pad), jnp.float32)),
        grid_spec=pltpu.PrefetchScalarGridSpec(
            num_scalar_prefetch=0,
            grid=(M_pad // tm,),
            in_specs=[a_spec, a_spec, w_spec, w_spec],
            out_specs=[o_spec, o_spec]),
        compiler_params=pltpu.CompilerParams(
            dimension_semantics=("parallel",),
            vmem_limit_bytes=vmem_limit),
        cost_estimate=cost,
    )(ar, ai, wr, wi)

    if M_pad != M:
        out_r = out_r[:, :, :M]
        out_i = out_i[:, :, :M]
    return out_r, out_i


class SpectralConv2dPallas:
    def __init__(self, in_channels, out_channels, modes1, modes2, key):
        self.in_channels = in_channels
        self.out_channels = out_channels
        self.modes1 = modes1
        self.modes2 = modes2
        scale = 1.0 / (in_channels * out_channels)
        shape = (in_channels, out_channels, modes1, modes2)
        k = jax.random.split(key, 4)

        def make_w(kr, ki):
            re = jax.random.uniform(kr, shape, dtype=jnp.float32)
            im = jax.random.uniform(ki, shape, dtype=jnp.float32)
            return (scale * lax.complex(re, im)).astype(jnp.complex64)

        # deterministic synthetic init matching torch.rand(..., dtype=cfloat) * scale
        self.weights1 = make_w(k[0], k[1])
        self.weights2 = make_w(k[2], k[3])

        # planar, mode-flattened float32 weight views built ONCE (hoisted out of forward)
        mprod = modes1 * modes2
        w_all = jnp.concatenate(
            [self.weights1.reshape(in_channels, out_channels, mprod),
             self.weights2.reshape(in_channels, out_channels, mprod)], axis=-1)
        self.w_r = jnp.real(w_all).astype(jnp.float32)
        self.w_i = jnp.imag(w_all).astype(jnp.float32)

    def __call__(self, x):
        B, Ci, D1, D2 = x.shape
        m1, m2 = self.modes1, self.modes2
        Co = self.out_channels
        mprod = m1 * m2
        W2 = D2 // 2 + 1

        # TODO(synk): rfftn/irfftn have no Pallas primitive; they stay as XLA FFT ops.
        x_ft = jnp.fft.rfftn(x, axes=(2, 3))                     # (B, Ci, D1, W2) complex64

        corners = [x_ft[:, :, :m1, :m2], x_ft[:, :, -m1:, :m2]]
        a_c = jnp.concatenate([c.reshape(B, Ci, mprod) for c in corners], axis=-1)
        # planar + channel-first (Cin, B, M) so the kernel loops over Cin on axis 0
        ar = jnp.real(a_c).transpose(1, 0, 2).astype(jnp.float32)
        ai = jnp.imag(a_c).transpose(1, 0, 2).astype(jnp.float32)

        out_r, out_i = spectral_modes_matmul(ar, ai, self.w_r, self.w_i)
        out_c = lax.complex(out_r, out_i)                        # complex built once, at scatter

        o0 = out_c[:, :, :mprod].reshape(B, Co, m1, m2)
        o1 = out_c[:, :, mprod:].reshape(B, Co, m1, m2)

        out_ft = jnp.zeros((B, Co, D1, W2), dtype=jnp.complex64)
        out_ft = out_ft.at[:, :, :m1, :m2].set(o0)
        out_ft = out_ft.at[:, :, -m1:, :m2].set(o1)
        return jnp.fft.irfftn(out_ft, s=(D1, D2), axes=(2, 3))


def _reference_forward(module, x):
    """Pure-JAX reference (einsum) mirroring the PyTorch forward, for validation."""
    B, Ci, D1, D2 = x.shape
    m1, m2 = module.modes1, module.modes2
    Co = module.out_channels
    x_ft = jnp.fft.rfftn(x, axes=(2, 3))
    mul = lambda a, b: jnp.einsum('bixy,ioxy->boxy', a, b)
    out_ft = jnp.zeros((B, Co, D1, D2 // 2 + 1), dtype=jnp.complex64)
    out_ft = out_ft.at[:, :, :m1, :m2].set(mul(x_ft[:, :, :m1, :m2], module.weights1))
    out_ft = out_ft.at[:, :, -m1:, :m2].set(mul(x_ft[:, :, -m1:, :m2], module.weights2))
    return jnp.fft.irfftn(out_ft, s=(D1, D2), axes=(2, 3))


if __name__ == "__main__":
    key = jax.random.PRNGKey(0)
    k_x, k_w = jax.random.split(key)

    B, Cin, Cout = 2, 4, 4
    D1 = D2 = 16
    modes1 = modes2 = 8          # M = 2 * m1 * m2 = 128 flattened modes (lane-dense)

    x = jax.random.normal(k_x, (B, Cin, D1, D2), dtype=jnp.float32)
    module = SpectralConv2dPallas(Cin, Cout, modes1, modes2, k_w)

    out = jax.block_until_ready(module(x))
    ref = jax.block_until_ready(_reference_forward(module, x))

    assert out.shape == (B, Cout, D1, D2)
    assert jnp.allclose(out, ref, atol=1e-4, rtol=1e-4), "mismatch vs reference"
    print("KERNEL_OK")
</pallas_src>

<mosaic_0001>
module attributes {stable_mosaic.version = 11 : i64} {
  func.func @_spectral_mul_kernel(%arg0: i32, %arg1: memref<4x2x128xf32, #tpu.memory_space<vmem>>, %arg2: memref<4x2x128xf32, #tpu.memory_space<vmem>>, %arg3: memref<4x4x128xf32, #tpu.memory_space<vmem>>, %arg4: memref<4x4x128xf32, #tpu.memory_space<vmem>>, %arg5: memref<2x4x128xf32, #tpu.memory_space<vmem>>, %arg6: memref<2x4x128xf32, #tpu.memory_space<vmem>>) attributes {dimension_semantics = [#tpu.dimension_semantics<parallel>], iteration_bounds = array<i64: 1>, scalar_prefetch = 0 : i64, scratch_operands = 0 : i64, tpu.core_type = #tpu.core_type<tc>, window_params = [{transform_indices = @transform_0, window_bounds = array<i64: 4, 2, 128>}, {transform_indices = @transform_1, window_bounds = array<i64: 4, 2, 128>}, {transform_indices = @transform_2, window_bounds = array<i64: 4, 4, 128>}, {transform_indices = @transform_3, window_bounds = array<i64: 4, 4, 128>}, {transform_indices = @transform_4, window_bounds = array<i64: 2, 4, 128>}, {transform_indices = @transform_5, window_bounds = array<i64: 2, 4, 128>}]} {
    %cst = arith.constant 0.000000e+00 : f32
    %0 = vector.broadcast %cst : f32 to vector<2x4x128xf32>
    %c0_i32 = arith.constant 0 : i32
    %1 = arith.index_cast %c0_i32 : i32 to index
    %c0 = arith.constant 0 : index
    %c0_0 = arith.constant 0 : index
    %2 = vector.load %arg1[%1, %c0, %c0_0] : memref<4x2x128xf32, #tpu.memory_space<vmem>>, vector<1x2x128xf32>
    %3 = vector.shape_cast %2 : vector<1x2x128xf32> to vector<2x128xf32>
    %4 = arith.index_cast %c0_i32 : i32 to index
    %c0_1 = arith.constant 0 : index
    %c0_2 = arith.constant 0 : index
    %5 = vector.load %arg2[%4, %c0_1, %c0_2] : memref<4x2x128xf32, #tpu.memory_space<vmem>>, vector<1x2x128xf32>
    %6 = vector.shape_cast %5 : vector<1x2x128xf32> to vector<2x128xf32>
    %7 = arith.index_cast %c0_i32 : i32 to index
    %c0_3 = arith.constant 0 : index
    %c0_4 = arith.constant 0 : index
    %8 = vector.load %arg3[%7, %c0_3, %c0_4] : memref<4x4x128xf32, #tpu.memory_space<vmem>>, vector<1x4x128xf32>
    %9 = vector.shape_cast %8 : vector<1x4x128xf32> to vector<4x128xf32>
    %10 = arith.index_cast %c0_i32 : i32 to index
    %c0_5 = arith.constant 0 : index
    %c0_6 = arith.constant 0 : index
    %11 = vector.load %arg4[%10, %c0_5, %c0_6] : memref<4x4x128xf32, #tpu.memory_space<vmem>>, vector<1x4x128xf32>
    %12 = vector.shape_cast %11 : vector<1x4x128xf32> to vector<4x128xf32>
    %13 = arith.addf %3, %6 : vector<2x128xf32>
    %14 = vector.shape_cast %13 : vector<2x128xf32> to vector<2x1x128xf32>
    %15 = vector.shape_cast %9 : vector<4x128xf32> to vector<1x4x128xf32>
    %16 = vector.broadcast %14 : vector<2x1x128xf32> to vector<2x4x128xf32>
    %17 = vector.broadcast %15 : vector<1x4x128xf32> to vector<2x4x128xf32>
    %18 = arith.mulf %16, %17 : vector<2x4x128xf32>
    %19 = vector.shape_cast %3 : vector<2x128xf32> to vector<2x1x128xf32>
    %20 = arith.subf %12, %9 : vector<4x128xf32>
    %21 = vector.shape_cast %20 : vector<4x128xf32> to vector<1x4x128xf32>
    %22 = vector.broadcast %19 : vector<2x1x128xf32> to vector<2x4x128xf32>
    %23 = vector.broadcast %21 : vector<1x4x128xf32> to vector<2x4x128xf32>
    %24 = arith.mulf %22, %23 : vector<2x4x128xf32>
    %25 = vector.shape_cast %6 : vector<2x128xf32> to vector<2x1x128xf32>
    %26 = arith.addf %9, %12 : vector<4x128xf32>
    %27 = vector.shape_cast %26 : vector<4x128xf32> to vector<1x4x128xf32>
    %28 = vector.broadcast %25 : vector<2x1x128xf32> to vector<2x4x128xf32>
    %29 = vector.broadcast %27 : vector<1x4x128xf32> to vector<2x4x128xf32>
    %30 = arith.mulf %28, %29 : vector<2x4x128xf32>
    %31 = arith.subf %18, %30 : vector<2x4x128xf32>
    %32 = arith.addf %0, %31 : vector<2x4x128xf32>
    %33 = arith.addf %18, %24 : vector<2x4x128xf32>
    %34 = arith.addf %0, %33 : vector<2x4x128xf32>
    %c1_i32 = arith.constant 1 : i32
    %35 = arith.index_cast %c1_i32 : i32 to index
    %c0_7 = arith.constant 0 : index
    %c0_8 = arith.constant 0 : index
    %36 = vector.load %arg1[%35, %c0_7, %c0_8] : memref<4x2x128xf32, #tpu.memory_space<vmem>>, vector<1x2x128xf32>
    %37 = vector.shape_cast %36 : vector<1x2x128xf32> to vector<2x128xf32>
    %38 = arith.index_cast %c1_i32 : i32 to index
    %c0_9 = arith.constant 0 : index
    %c0_10 = arith.constant 0 : index
    %39 = vector.load %arg2[%38, %c0_9, %c0_10] : memref<4x2x128xf32, #tpu.memory_space<vmem>>, vector<1x2x128xf32>
    %40 = vector.shape_cast %39 : vector<1x2x128xf32> to vector<2x128xf32>
    %41 = arith.index_cast %c1_i32 : i32 to index
    %c0_11 = arith.constant 0 : index
    %c0_12 = arith.constant 0 : index
    %42 = vector.load %arg3[%41, %c0_11, %c0_12] : memref<4x4x128xf32, #tpu.memory_space<vmem>>, vector<1x4x128xf32>
    %43 = vector.shape_cast %42 : vector<1x4x128xf32> to vector<4x128xf32>
    %44 = arith.index_cast %c1_i32 : i32 to index
    %c0_13 = arith.constant 0 : index
    %c0_14 = arith.constant 0 : index
    %45 = vector.load %arg4[%44, %c0_13, %c0_14] : memref<4x4x128xf32, #tpu.memory_space<vmem>>, vector<1x4x128xf32>
    %46 = vector.shape_cast %45 : vector<1x4x128xf32> to vector<4x128xf32>
    %47 = arith.addf %37, %40 : vector<2x128xf32>
    %48 = vector.shape_cast %47 : vector<2x128xf32> to vector<2x1x128xf32>
    %49 = vector.shape_cast %43 : vector<4x128xf32> to vector<1x4x128xf32>
    %50 = vector.broadcast %48 : vector<2x1x128xf32> to vector<2x4x128xf32>
    %51 = vector.broadcast %49 : vector<1x4x128xf32> to vector<2x4x128xf32>
    %52 = arith.mulf %50, %51 : vector<2x4x128xf32>
    %53 = vector.shape_cast %37 : vector<2x128xf32> to vector<2x1x128xf32>
    %54 = arith.subf %46, %43 : vector<4x128xf32>
    %55 = vector.shape_cast %54 : vector<4x128xf32> to vector<1x4x128xf32>
    %56 = vector.broadcast %53 : vector<2x1x128xf32> to vector<2x4x128xf32>
    %57 = vector.broadcast %55 : vector<1x4x128xf32> to vector<2x4x128xf32>
    %58 = arith.mulf %56, %57 : vector<2x4x128xf32>
    %59 = vector.shape_cast %40 : vector<2x128xf32> to vector<2x1x128xf32>
    %60 = arith.addf %43, %46 : vector<4x128xf32>
    %61 = vector.shape_cast %60 : vector<4x128xf32> to vector<1x4x128xf32>
    %62 = vector.broadcast %59 : vector<2x1x128xf32> to vector<2x4x128xf32>
    %63 = vector.broadcast %61 : vector<1x4x128xf32> to vector<2x4x128xf32>
    %64 = arith.mulf %62, %63 : vector<2x4x128xf32>
    %65 = arith.subf %52, %64 : vector<2x4x128xf32>
    %66 = arith.addf %32, %65 : vector<2x4x128xf32>
    %67 = arith.addf %52, %58 : vector<2x4x128xf32>
    %68 = arith.addf %34, %67 : vector<2x4x128xf32>
    %c2_i32 = arith.constant 2 : i32
    %69 = arith.index_cast %c2_i32 : i32 to index
    %c0_15 = arith.constant 0 : index
    %c0_16 = arith.constant 0 : index
    %70 = vector.load %arg1[%69, %c0_15, %c0_16] : memref<4x2x128xf32, #tpu.memory_space<vmem>>, vector<1x2x128xf32>
    %71 = vector.shape_cast %70 : vector<1x2x128xf32> to vector<2x128xf32>
    %72 = arith.index_cast %c2_i32 : i32 to index
    %c0_17 = arith.constant 0 : index
    %c0_18 = arith.constant 0 : index
    %73 = vector.load %arg2[%72, %c0_17, %c0_18] : memref<4x2x128xf32, #tpu.memory_space<vmem>>, vector<1x2x128xf32>
    %74 = vector.shape_cast %73 : vector<1x2x128xf32> to vector<2x128xf32>
    %75 = arith.index_cast %c2_i32 : i32 to index
    %c0_19 = arith.constant 0 : index
    %c0_20 = arith.constant 0 : index
    %76 = vector.load %arg3[%75, %c0_19, %c0_20] : memref<4x4x128xf32, #tpu.memory_space<vmem>>, vector<1x4x128xf32>
    %77 = vector.shape_cast %76 : vector<1x4x128xf32> to vector<4x128xf32>
    %78 = arith.index_cast %c2_i32 : i32 to index
    %c0_21 = arith.constant 0 : index
    %c0_22 = arith.constant 0 : index
    %79 = vector.load %arg4[%78, %c0_21, %c0_22] : memref<4x4x128xf32, #tpu.memory_space<vmem>>, vector<1x4x128xf32>
    %80 = vector.shape_cast %79 : vector<1x4x128xf32> to vector<4x128xf32>
    %81 = arith.addf %71, %74 : vector<2x128xf32>
    %82 = vector.shape_cast %81 : vector<2x128xf32> to vector<2x1x128xf32>
    %83 = vector.shape_cast %77 : vector<4x128xf32> to vector<1x4x128xf32>
    %84 = vector.broadcast %82 : vector<2x1x128xf32> to vector<2x4x128xf32>
    %85 = vector.broadcast %83 : vector<1x4x128xf32> to vector<2x4x128xf32>
    %86 = arith.mulf %84, %85 : vector<2x4x128xf32>
    %87 = vector.shape_cast %71 : vector<2x128xf32> to vector<2x1x128xf32>
    %88 = arith.subf %80, %77 : vector<4x128xf32>
    %89 = vector.shape_cast %88 : vector<4x128xf32> to vector<1x4x128xf32>
    %90 = vector.broadcast %87 : vector<2x1x128xf32> to vector<2x4x128xf32>
    %91 = vector.broadcast %89 : vector<1x4x128xf32> to vector<2x4x128xf32>
    %92 = arith.mulf %90, %91 : vector<2x4x128xf32>
    %93 = vector.shape_cast %74 : vector<2x128xf32> to vector<2x1x128xf32>
    %94 = arith.addf %77, %80 : vector<4x128xf32>
    %95 = vector.shape_cast %94 : vector<4x128xf32> to vector<1x4x128xf32>
    %96 = vector.broadcast %93 : vector<2x1x128xf32> to vector<2x4x128xf32>
    %97 = vector.broadcast %95 : vector<1x4x128xf32> to vector<2x4x128xf32>
    %98 = arith.mulf %96, %97 : vector<2x4x128xf32>
    %99 = arith.subf %86, %98 : vector<2x4x128xf32>
    %100 = arith.addf %66, %99 : vector<2x4x128xf32>
    %101 = arith.addf %86, %92 : vector<2x4x128xf32>
    %102 = arith.addf %68, %101 : vector<2x4x128xf32>
    %c3_i32 = arith.constant 3 : i32
    %103 = arith.index_cast %c3_i32 : i32 to index
    %c0_23 = arith.constant 0 : index
    %c0_24 = arith.constant 0 : index
    %104 = vector.load %arg1[%103, %c0_23, %c0_24] : memref<4x2x128xf32, #tpu.memory_space<vmem>>, vector<1x2x128xf32>
    %105 = vector.shape_cast %104 : vector<1x2x128xf32> to vector<2x128xf32>
    %106 = arith.index_cast %c3_i32 : i32 to index
    %c0_25 = arith.constant 0 : index
    %c0_26 = arith.constant 0 : index
    %107 = vector.load %arg2[%106, %c0_25, %c0_26] : memref<4x2x128xf32, #tpu.memory_space<vmem>>, vector<1x2x128xf32>
    %108 = vector.shape_cast %107 : vector<1x2x128xf32> to vector<2x128xf32>
    %109 = arith.index_cast %c3_i32 : i32 to index
    %c0_27 = arith.constant 0 : index
    %c0_28 = arith.constant 0 : index
    %110 = vector.load %arg3[%109, %c0_27, %c0_28] : memref<4x4x128xf32, #tpu.memory_space<vmem>>, vector<1x4x128xf32>
    %111 = vector.shape_cast %110 : vector<1x4x128xf32> to vector<4x128xf32>
    %112 = arith.index_cast %c3_i32 : i32 to index
    %c0_29 = arith.constant 0 : index
    %c0_30 = arith.constant 0 : index
    %113 = vector.load %arg4[%112, %c0_29, %c0_30] : memref<4x4x128xf32, #tpu.memory_space<vmem>>, vector<1x4x128xf32>
    %114 = vector.shape_cast %113 : vector<1x4x128xf32> to vector<4x128xf32>
    %115 = arith.addf %105, %108 : vector<2x128xf32>
    %116 = vector.shape_cast %115 : vector<2x128xf32> to vector<2x1x128xf32>
    %117 = vector.shape_cast %111 : vector<4x128xf32> to vector<1x4x128xf32>
    %118 = vector.broadcast %116 : vector<2x1x128xf32> to vector<2x4x128xf32>
    %119 = vector.broadcast %117 : vector<1x4x128xf32> to vector<2x4x128xf32>
    %120 = arith.mulf %118, %119 : vector<2x4x128xf32>
    %121 = vector.shape_cast %105 : vector<2x128xf32> to vector<2x1x128xf32>
    %122 = arith.subf %114, %111 : vector<4x128xf32>
    %123 = vector.shape_cast %122 : vector<4x128xf32> to vector<1x4x128xf32>
    %124 = vector.broadcast %121 : vector<2x1x128xf32> to vector<2x4x128xf32>
    %125 = vector.broadcast %123 : vector<1x4x128xf32> to vector<2x4x128xf32>
    %126 = arith.mulf %124, %125 : vector<2x4x128xf32>
    %127 = vector.shape_cast %108 : vector<2x128xf32> to vector<2x1x128xf32>
    %128 = arith.addf %111, %114 : vector<4x128xf32>
    %129 = vector.shape_cast %128 : vector<4x128xf32> to vector<1x4x128xf32>
    %130 = vector.broadcast %127 : vector<2x1x128xf32> to vector<2x4x128xf32>
    %131 = vector.broadcast %129 : vector<1x4x128xf32> to vector<2x4x128xf32>
    %132 = arith.mulf %130, %131 : vector<2x4x128xf32>
    %133 = arith.subf %120, %132 : vector<2x4x128xf32>
    %134 = arith.addf %100, %133 : vector<2x4x128xf32>
    %135 = arith.addf %120, %126 : vector<2x4x128xf32>
    %136 = arith.addf %102, %135 : vector<2x4x128xf32>
    %c4_i32 = arith.constant 4 : i32
    %c0_31 = arith.constant 0 : index
    %c0_32 = arith.constant 0 : index
    %c0_33 = arith.constant 0 : index
    %137 = vector.load %arg5[%c0_31, %c0_32, %c0_33] : memref<2x4x128xf32, #tpu.memory_space<vmem>>, vector<2x4x128xf32>
    tpu.vector_store %arg5[%c0_31, %c0_32, %c0_33], %134 {strides = array<i32>} : memref<2x4x128xf32, #tpu.memory_space<vmem>>, vector<2x4x128xf32>,
    %c0_34 = arith.constant 0 : index
    %c0_35 = arith.constant 0 : index
    %c0_36 = arith.constant 0 : index
    %138 = vector.load %arg6[%c0_34, %c0_35, %c0_36] : memref<2x4x128xf32, #tpu.memory_space<vmem>>, vector<2x4x128xf32>
    tpu.vector_store %arg6[%c0_34, %c0_35, %c0_36], %136 {strides = array<i32>} : memref<2x4x128xf32, #tpu.memory_space<vmem>>, vector<2x4x128xf32>,
    return
  }
  func.func @transform_0(%arg0: i32) -> (i32, i32, i32) {
    %c0_i32 = arith.constant 0 : i32
    %c0_i32_0 = arith.constant 0 : i32
    %c0_i32_1 = arith.constant 0 : i32
    return %c0_i32, %c0_i32_0, %arg0 : i32, i32, i32
  }
  func.func @transform_1(%arg0: i32) -> (i32, i32, i32) {
    %c0_i32 = arith.constant 0 : i32
    %c0_i32_0 = arith.constant 0 : i32
    %c0_i32_1 = arith.constant 0 : i32
    return %c0_i32, %c0_i32_0, %arg0 : i32, i32, i32
  }
  func.func @transform_2(%arg0: i32) -> (i32, i32, i32) {
    %c0_i32 = arith.constant 0 : i32
    %c0_i32_0 = arith.constant 0 : i32
    %c0_i32_1 = arith.constant 0 : i32
    return %c0_i32, %c0_i32_0, %arg0 : i32, i32, i32
  }
  func.func @transform_3(%arg0: i32) -> (i32, i32, i32) {
    %c0_i32 = arith.constant 0 : i32
    %c0_i32_0 = arith.constant 0 : i32
    %c0_i32_1 = arith.constant 0 : i32
    return %c0_i32, %c0_i32_0, %arg0 : i32, i32, i32
  }
  func.func @transform_4(%arg0: i32) -> (i32, i32, i32) {
    %c0_i32 = arith.constant 0 : i32
    %c0_i32_0 = arith.constant 0 : i32
    %c0_i32_1 = arith.constant 0 : i32
    return %c0_i32, %c0_i32_0, %arg0 : i32, i32, i32
  }
  func.func @transform_5(%arg0: i32) -> (i32, i32, i32) {
    %c0_i32 = arith.constant 0 : i32
    %c0_i32_0 = arith.constant 0 : i32
    %c0_i32_1 = arith.constant 0 : i32
    return %c0_i32, %c0_i32_0, %arg0 : i32, i32, i32
  }
}

</mosaic_0001>

<bundles_post_ra>
// kernel: tpu_custom_call.1
= control target key start
LH: loop header
LB: loop body
LE: loop exit
PB: predicated region body
PF: predicated region fallthrough
CT: control target
= control target key end

     0   :  { %11 = vsyncpa [#allocation3], 0  ;;  %s1061_s0 = inlined_call_operand.hbm [shape: f32[4,2,128], index: 0, kind: input, shape index: {}]   ;;  %s1062_s1 = inlined_call_operand.hbm [shape: f32[4,2,128], index: 1, kind: input, shape index: {}]   ;;  %s1063_s2 = inlined_call_operand.hbm [shape: f32[4,4,128], index: 2, kind: input, shape index: {}]   ;;  %s1064_s3 = inlined_call_operand.hbm [shape: f32[4,4,128], index: 3, kind: input, shape index: {}]   ;;  %s1065_s4 = inlined_call_operand.hbm [shape: f32[2,4,128], index: 4, kind: output, shape index: {0}]   ;;  %s1066_s5 = inlined_call_operand.hbm [shape: f32[2,4,128], index: 5, kind: output, shape index: {1}]  }
   0x1   :  { %12 = vsyncpa [#allocation6], 0 }
   0x2   :  { %13 = vsyncpa [#allocation9], 0 }
   0x3   :  { %14 = vsyncpa [#allocation4], 0 }
   0x4   :  { %15 = vsyncpa [#allocation12], 0  ;;  %s760_s18 = smov [#allocation5]   ;;  %s761_s20 = smov [#allocation2]  }
   0x5   :  { %s33_s19 = sshll.u32 %s760_s18, 4  ;;  %s21_s21 = sshll.u32 %s761_s20, 4  ;;  %s34_s19 = int_to_ptr.vmem [resolvable:$true] %s33_s19  ;;  %s801_s21 = int_to_ptr.vmem [resolvable:$true] %s21_s21 }
   0x6   :  { %s618_s24 = scalar_lea.hbm %s1062_s1, 128 }
   0x7   :  { %p619_p0 = scmp.ne.s32.totalorder %s1062_s1, %s618_s24  ;;  %p622_p1 = scmp.lt.u32.totalorder %s618_s24, %s1062_s1 }
   0x9   :  { %p624_p2 = pnand %p622_p1, %p619_p0 }
   0xb   :  { %627 = shalt.err (!%p624_p2)
}
   0xc   :  { %s628_s29 = scalar_lea.vmem %s34_s19, 128  ;;  %p633_p4 = scmp.lt.s32.totalorder %s34_s19, %s34_s19 }
   0xd   :  { %p629_p3 = scmp.ne.s32.totalorder %s34_s19, %s628_s29  ;;  %p634_p5 = scmp.lt.s32.totalorder %s628_s29, %s628_s29 }
   0xf   :  { %p635_p6 = por %p634_p5, %p633_p4 }
  0x11   :  { %p636_p7 = pnand %p635_p6, %p629_p3 }
  0x13   :  { %639 = shalt.err (!%p636_p7)
}
  0x14   :  { %s762_s30 = smov 32   ;;  %s763_s6 = smov 2  }
  0x15   :  { %39 = dma.hbm_to_vmem [thread:$0]  %s1062_s1, 128, %s34_s19, [#allocation6], %s762_s30, %s762_s30, %s763_s6  }
  0x16   :  { %s640_s11 = scalar_lea.hbm %s1061_s0, 128 }
  0x17   :  { %p641_p8 = scmp.ne.s32.totalorder %s1061_s0, %s640_s11  ;;  %p644_p9 = scmp.lt.u32.totalorder %s640_s11, %s1061_s0 }
  0x19   :  { %p646_p10 = pnand %p644_p9, %p641_p8 }
  0x1b   :  { %649 = shalt.err (!%p646_p10)
}
  0x1c   :  { %s650_s16 = scalar_lea.vmem %s801_s21, 128  ;;  %p655_p12 = scmp.lt.s32.totalorder %s801_s21, %s801_s21 }
  0x1d   :  { %p651_p11 = scmp.ne.s32.totalorder %s801_s21, %s650_s16  ;;  %p656_p13 = scmp.lt.s32.totalorder %s650_s16, %s650_s16 }
  0x1f   :  { %p657_p0 = por %p656_p13, %p655_p12 }
  0x21   :  { %p658_p1 = pnand %p657_p0, %p651_p11 }
  0x23   :  { %661 = shalt.err (!%p658_p1)
}
  0x24   :  { %27 = dma.hbm_to_vmem [thread:$0]  %s1061_s0, 128, %s801_s21, [#allocation3], %s762_s30, %s762_s30, %s763_s6  }
  0x25   :  { %s764_s18 = smov [#allocation7]   ;;  %s662_s23 = scalar_lea.hbm %s1063_s2, 256 }
  0x26   :  { %s45_s19 = sshll.u32 %s764_s18, 4  ;;  %p663_p2 = scmp.ne.s32.totalorder %s1063_s2, %s662_s23  ;;  %s46_s19 = int_to_ptr.vmem [resolvable:$true] %s45_s19 }
  0x27   :  { %p666_p3 = scmp.lt.u32.totalorder %s662_s23, %s1063_s2 }
  0x29   :  { %p668_p4 = pnand %p666_p3, %p663_p2 }
  0x2b   :  { %671 = shalt.err (!%p668_p4)
}
  0x2c   :  { %s672_s28 = scalar_lea.vmem %s46_s19, 256  ;;  %p677_p6 = scmp.lt.s32.totalorder %s46_s19, %s46_s19 }
  0x2d   :  { %p673_p5 = scmp.ne.s32.totalorder %s46_s19, %s672_s28  ;;  %p678_p7 = scmp.lt.s32.totalorder %s672_s28, %s672_s28 }
  0x2f   :  { %p679_p8 = por %p678_p7, %p677_p6 }
  0x31   :  { %p680_p9 = pnand %p679_p8, %p673_p5 }
  0x33   :  { %683 = shalt.err (!%p680_p9)
}
  0x34   :  { %s765_s0 = smov 64   ;;  %s766_s21 = smov 4  }
  0x35   :  { %51 = dma.hbm_to_vmem [thread:$0]  %s1063_s2, 256, %s46_s19, [#allocation6], %s765_s0, %s765_s0, %s766_s21  }
  0x36   :  { %s767_s6 = smov [#allocation8]   ;;  %s684_s10 = scalar_lea.hbm %s1064_s3, 256 }
  0x37   :  { %s57_s7 = sshll.u32 %s767_s6, 4  ;;  %p685_p10 = scmp.ne.s32.totalorder %s1064_s3, %s684_s10  ;;  %s58_s7 = int_to_ptr.vmem [resolvable:$true] %s57_s7 }
  0x38   :  { %p688_p11 = scmp.lt.u32.totalorder %s684_s10, %s1064_s3 }
  0x3a   :  { %p690_p12 = pnand %p688_p11, %p685_p10 }
  0x3c   :  { %693 = shalt.err (!%p690_p12)
}
  0x3d   :  { %s694_s15 = scalar_lea.vmem %s58_s7, 256  ;;  %p699_p0 = scmp.lt.s32.totalorder %s58_s7, %s58_s7 }
  0x3e   :  { %p695_p13 = scmp.ne.s32.totalorder %s58_s7, %s694_s15  ;;  %p700_p1 = scmp.lt.s32.totalorder %s694_s15, %s694_s15 }
  0x40   :  { %p701_p2 = por %p700_p1, %p699_p0 }
  0x42   :  { %p702_p3 = pnand %p701_p2, %p695_p13 }
  0x44   :  { %705 = shalt.err (!%p702_p3)
}
  0x45   :  { %63 = dma.hbm_to_vmem [thread:$0]  %s1064_s3, 256, %s58_s7, [#allocation9], %s765_s0, %s765_s0, %s766_s21  }
  0x46   :  { %750 = dma.done.wait [#allocation3], 128  }
  0x47   :  { %751 = vsyncadd [#allocation3], 4294967168 }
  0x48   :  { %752 = dma.done.wait [#allocation6], 384  }
  0x49   :  { %753 = vsyncadd [#allocation6], 4294966912 }
  0x4a   :  { %754 = dma.done.wait [#allocation9], 256  }
  0x4b   :  { %755 = vsyncadd [#allocation9], 4294967040  ;;  %v85_v0 = vlaneseq  ;;  %v768_v1 = vmov 1966171168   ;;  %v76_v7 = vld [vmem:[#allocation2] sm:$0x3] }
  0x4c   :  { %v83_v2 = vunpack.c.l.s4 %v768_v1  ;;  %v77_v8 = vld [vmem:[#allocation5] sm:$0x3]  ;;  %v866_v9 = vld [vmem:[#allocation7] sm:$0xf]  ;;  %v79_v10 = vld [vmem:[#allocation8] sm:$0xf] }
  0x4d   :  { %v86_v3 = vshrl.u32 %v85_v0, 7  ;;  %v80_v11 = vadd.f32 %v77_v8, %v76_v7  ;;  %v869_v13 = vld [vmem:[#allocation2 + $0x2] sm:$0x3]  ;;  %v199_v14 = vld [vmem:[#allocation5 + $0x2] sm:$0x3]  ;;  %v875_v16 = vadd.f32 %v79_v10, %v866_v9  ;;  %v886_v22 = vsub.f32 %v79_v10, %v866_v9  ;;  %s769_s3 = smov [#allocation10]  }
  0x4e   :  { %v84_v4 = vunpack.c.0.s8 %v83_v2  ;;  %v877_v17 = vld [vmem:[#allocation7 + $0x4] sm:$0xf]  ;;  %v879_v18 = vld [vmem:[#allocation8 + $0x4] sm:$0xf]  ;;  %v204_v19 = vadd.f32 %v199_v14, %v869_v13  ;;  %v323_v26 = vld [vmem:[#allocation5 + $0x4] sm:$0x3] }
  0x4f   :  { %v864_v6 = vsub.s32 0, %v86_v3  ;;  %v883_v21 = vld [vmem:[#allocation2 + $0x4] sm:$0x3]  ;;  %v892_v25 = vadd.f32 %v879_v18, %v877_v17  ;;  %v894_v27 = vld [vmem:[#allocation7 + $0x8] sm:$0xf]  ;;  %s577_s1 = sshll.u32 %s769_s3, 4  ;;  %s578_s1 = int_to_ptr.vmem [resolvable:$true] %s577_s1 }
  0x50   :  { %v862_v5 = vsub.s32 %v84_v4, %v86_v3  ;;  %v896_v28 = vld [vmem:[#allocation8 + $0x8] sm:$0xf]  ;;  %v328_v32 = vadd.f32 %v323_v26, %v883_v21  ;;  %v902_v34 = vld [vmem:[#allocation2 + $0x6] sm:$0x3]  ;;  %v447_v35 = vld [vmem:[#allocation5 + $0x6] sm:$0x3]  ;;  %p711_p5 = scmp.lt.s32.totalorder %s578_s1, %s578_s1 }
  0x51   :  { %v908_v38 = vadd.f32 %v896_v28, %v894_v27  ;;  %v452_v39 = vadd.f32 %v447_v35, %v902_v34  ;;  %v915_v44 = vld [vmem:[#allocation7 + $0xc] sm:$0xf]  ;;  %v917_v45 = vld [vmem:[#allocation8 + $0xc] sm:$0xf]  ;;  %s706_s17 = scalar_lea.vmem %s578_s1, 128 }
  0x52   :  { %v159_v12 = vrot.slane %v77_v8, %v862_v5  ;;  %v872_v15 = vrot.slane %v76_v7, %v862_v5  ;;  %v283_v20 = vrot.slane %v199_v14, %v862_v5  ;;  %v88_v23 = vrot.slane %v80_v11, %v862_v5  ;;  %p707_p4 = scmp.ne.s32.totalorder %s578_s1, %s706_s17  ;;  %p712_p6 = scmp.lt.s32.totalorder %s706_s17, %s706_s17 }
  0x53   :  { %v212_v30 = vrot.slane %v204_v19, %v862_v5  ;;  %v407_v33 = vrot.slane %v323_v26, %v862_v5  ;;  %v336_v42 = vrot.slane %v328_v32, %v862_v5  ;;  %v460_v48 = vrot.slane %v452_v39, %v862_v5 }
  0x54   :  { %v167_v24 = vrot.slane %v159_v12, %v862_v5  ;;  %v160_v29 = vcombine.high %v159_v12, %v159_v12  ;;  %v291_v31 = vrot.slane %v283_v20, %v862_v5  ;;  %v96_v36 = vrot.slane %v88_v23, %v862_v5  ;;  %p713_p7 = por %p712_p6, %p711_p5 }
  0x55   :  { %v220_v40 = vrot.slane %v212_v30, %v862_v5  ;;  %v415_v43 = vrot.slane %v407_v33, %v862_v5  ;;  %v531_v49 = vrot.slane %v447_v35, %v862_v5  ;;  %v344_v52 = vrot.slane %v336_v42, %v862_v5 }
  0x56   :  { %v179_v37 = vrot.slane %v167_v24, %v864_v6  ;;  %v303_v41 = vrot.slane %v291_v31, %v864_v6  ;;  %v107_v46 = vrot.slane %v96_v36, %v864_v6  ;;  %v468_v55 = vrot.slane %v460_v48, %v862_v5  ;;  %p714_p8 = pnand %p713_p7, %p707_p4 }
  0x57   :  { %v231_v50 = vrot.slane %v220_v40, %v864_v6  ;;  %v427_v53 = vrot.slane %v415_v43, %v864_v6  ;;  %v539_v56 = vrot.slane %v531_v49, %v862_v5  ;;  %v547_v57 = vadd.f32 %v917_v45, %v915_v44 }
  0x58   :  { %v186_v47 = vmul.f32 %v179_v37, %v875_v16  ;;  %v310_v51 = vmul.f32 %v303_v41, %v892_v25  ;;  %v928_v54 = vmul.f32 %v107_v46, %v866_v9  ;;  %v355_v59 = vrot.slane %v344_v52, %v864_v6 }
  0x59   :  { %v935_v58 = vmul.f32 %v231_v50, %v877_v17  ;;  %v434_v60 = vmul.f32 %v427_v53, %v908_v38  ;;  %v89_v61 = vcombine.high %v88_v23, %v88_v23  ;;  %v479_v63 = vrot.slane %v468_v55, %v864_v6 }
  0x5a   :  { %v188_v62 = vsub.f32 %v928_v54, %v186_v47  ;;  %v551_v0 = vrot.slane %v539_v56, %v864_v6  ;;  %v174_v1 = vrot.slane %v160_v29, %v862_v5  ;;  %v945_v3 = vmul.f32 %v355_v59, %v894_v27 }
  0x5b   :  { %v312_v2 = vsub.f32 %v935_v58, %v310_v51  ;;  %v103_v4 = vrot.slane %v89_v61, %v862_v5  ;;  %v213_v7 = vcombine.high %v212_v30, %v212_v30  ;;  %v949_v8 = vmul.f32 %v479_v63, %v915_v44 }
  0x5c   :  { %v558_v10 = vmul.f32 %v551_v0, %v547_v57  ;;  %v183_v11 = vrot.slane %v174_v1, %v864_v6  ;;  %v284_v12 = vcombine.high %v283_v20, %v283_v20  ;;  %v436_v19 = vsub.f32 %v945_v3, %v434_v60 }
  0x5d   :  { %v314_v14 = vadd.f32 %v312_v2, %v188_v62  ;;  %v111_v23 = vrot.slane %v103_v4, %v864_v6  ;;  %v227_v24 = vrot.slane %v213_v7, %v862_v5  ;;  %v337_v31 = vcombine.high %v336_v42, %v336_v42 }
  0x5e   :  { %v560_v26 = vsub.f32 %v949_v8, %v558_v10  ;;  %v187_v29 = vmul.f32 %v183_v11, %v875_v16  ;;  %v298_v30 = vrot.slane %v284_v12, %v862_v5  ;;  %v408_v36 = vcombine.high %v407_v33, %v407_v33 }
  0x5f   :  { %v438_v32 = vadd.f32 %v436_v19, %v314_v14  ;;  %v959_v35 = vmul.f32 %v111_v23, %v866_v9  ;;  %v235_v20 = vrot.slane %v227_v24, %v864_v6  ;;  %v351_v39 = vrot.slane %v337_v31, %v862_v5 }
  0x60   :  { %v307_v37 = vrot.slane %v298_v30, %v864_v6  ;;  %v461_v40 = vcombine.high %v460_v48, %v460_v48  ;;  %v532_v41 = vcombine.high %v531_v49, %v531_v49  ;;  %v422_v42 = vrot.slane %v408_v36, %v862_v5 }
  0x61   :  { %v562_v43 = vadd.f32 %v560_v26, %v438_v32  ;;  %v189_v46 = vsub.f32 %v959_v35, %v187_v29  ;;  %v966_v16 = vmul.f32 %v235_v20, %v877_v17  ;;  %v359_v47 = vrot.slane %v351_v39, %v864_v6 }
  0x62   :  { %v311_v9 = vmul.f32 %v307_v37, %v892_v25  ;;  %v475_v33 = vrot.slane %v461_v40, %v862_v5  ;;  %v546_v50 = vrot.slane %v532_v41, %v862_v5  ;;  %v431_v48 = vrot.slane %v422_v42, %v864_v6 }
  0x63   :  { %568 = vst [vmem:[#allocation10] sm:$0xf] %v562_v43  ;;  %v131_v49 = vrot.slane %v872_v15, %v862_v5  ;;  %v247_v51 = vrot.slane %v869_v13, %v862_v5  ;;  %v980_v52 = vsub.f32 %v879_v18, %v877_v17  ;;  %v984_v53 = vmul.f32 %v359_v47, %v894_v27 }
  0x64   :  { %v313_v25 = vsub.f32 %v966_v16, %v311_v9  ;;  %v483_v55 = vrot.slane %v475_v33, %v864_v6  ;;  %v555_v56 = vrot.slane %v546_v50, %v864_v6  ;;  %v435_v59 = vmul.f32 %v431_v48, %v908_v38 }
  0x65   :  { %v143_v60 = vrot.slane %v131_v49, %v864_v6  ;;  %v255_v61 = vrot.slane %v247_v51, %v862_v5  ;;  %v371_v13 = vrot.slane %v883_v21, %v862_v5  ;;  %v387_v63 = vsub.f32 %v896_v28, %v894_v27 }
  0x66   :  { %v315_v17 = vadd.f32 %v313_v25, %v189_v46  ;;  %v994_v18 = vmul.f32 %v483_v55, %v915_v44  ;;  %v559_v62 = vmul.f32 %v555_v56, %v547_v57  ;;  %v437_v0 = vsub.f32 %v984_v53, %v435_v59 }
  0x67   :  { %v150_v1 = vmul.f32 %v143_v60, %v886_v22  ;;  %v267_v38 = vrot.slane %v255_v61, %v864_v6  ;;  %v379_v2 = vrot.slane %v371_v13, %v862_v5  ;;  %v495_v21 = vrot.slane %v902_v34, %v862_v5 }
  0x68   :  { %v561_v4 = vsub.f32 %v994_v18, %v559_v62  ;;  %v511_v7 = vsub.f32 %v917_v45, %v915_v44  ;;  %v124_v57 = vcombine.high %v872_v15, %v872_v15  ;;  %v439_v27 = vadd.f32 %v437_v0, %v315_v17 }
  0x69   :  { %v192_v28 = vadd.f32 %v150_v1, %v928_v54  ;;  %v274_v10 = vmul.f32 %v267_v38, %v980_v52  ;;  %v391_v11 = vrot.slane %v379_v2, %v864_v6  ;;  %v503_v12 = vrot.slane %v495_v21, %v862_v5 }
  0x6a   :  { %v138_v14 = vrot.slane %v124_v57, %v862_v5  ;;  %v248_v34 = vcombine.high %v247_v51, %v247_v51  ;;  %v372_v19 = vcombine.high %v371_v13, %v371_v13  ;;  %v563_v23 = vadd.f32 %v561_v4, %v439_v27 }
  0x6b   :  { %v316_v44 = vadd.f32 %v274_v10, %v935_v58  ;;  %v398_v45 = vmul.f32 %v391_v11, %v387_v63  ;;  %v496_v15 = vcombine.high %v495_v21, %v495_v21  ;;  %v515_v24 = vrot.slane %v503_v12, %v864_v6 }
  0x6c   :  { %v147_v54 = vrot.slane %v138_v14, %v864_v6  ;;  %v262_v26 = vrot.slane %v248_v34, %v862_v5  ;;  %v386_v29 = vrot.slane %v372_v19, %v862_v5  ;;  %569 = vst [vmem:[#allocation10 + $0x4] sm:$0xf] %v563_v23 }
  0x6d   :  { %v318_v30 = vadd.f32 %v316_v44, %v192_v28  ;;  %v440_v31 = vadd.f32 %v398_v45, %v945_v3  ;;  %v510_v32 = vrot.slane %v496_v15, %v862_v5  ;;  %v522_v20 = vmul.f32 %v515_v24, %v511_v7 }
  0x6e   :  { %v151_v58 = vmul.f32 %v147_v54, %v886_v22  ;;  %v271_v36 = vrot.slane %v262_v26, %v864_v6  ;;  %v395_v37 = vrot.slane %v386_v29, %v864_v6 }
  0x6f   :  { %717 = shalt.err (!%p714_p8)
}
  0x70   :  { %s718_s20 = scalar_lea.hbm %s1065_s4, 128 }
  0x71   :  { %p719_p9 = scmp.ne.s32.totalorder %s1065_s4, %s718_s20  ;;  %p722_p10 = scmp.lt.u32.totalorder %s718_s20, %s1065_s4 }
  0x73   :  { %p724_p11 = pnand %p722_p10, %p719_p9 }
  0x75   :  { %727 = shalt.err (!%p724_p11)
}
  0x76   :  { %583 = dma.vmem_to_hbm [thread:$0]  %s578_s1, 128, %s1065_s4, [#allocation4], %s765_s0, %s765_s0, %s766_s21   ;;  %v442_v5 = vadd.f32 %v440_v31, %v318_v30  ;;  %v519_v22 = vrot.slane %v510_v32, %v864_v6  ;;  %v564_v3 = vadd.f32 %v522_v20, %v949_v8  ;;  %v193_v39 = vadd.f32 %v151_v58, %v959_v35 }
  0x77   :  { %v275_v40 = vmul.f32 %v271_v36, %v980_v52  ;;  %v399_v41 = vmul.f32 %v395_v37, %v387_v63  ;;  %s770_s4 = smov [#allocation11]  }
  0x78   :  { %v523_v43 = vmul.f32 %v519_v22, %v511_v7  ;;  %v566_v46 = vadd.f32 %v564_v3, %v442_v5  ;;  %s589_s28 = sshll.u32 %s770_s4, 4  ;;  %s590_s28 = int_to_ptr.vmem [resolvable:$true] %s589_s28 }
  0x79   :  { %v317_v42 = vadd.f32 %v275_v40, %v966_v16  ;;  %v441_v9 = vadd.f32 %v399_v41, %v984_v53  ;;  %s728_s29 = scalar_lea.vmem %s590_s28, 128  ;;  %p733_p13 = scmp.lt.s32.totalorder %s590_s28, %s590_s28 }
  0x7a   :  { %570 = vst [vmem:[#allocation11] sm:$0xf] %v566_v46  ;;  %v565_v33 = vadd.f32 %v523_v43, %v994_v18  ;;  %p729_p12 = scmp.ne.s32.totalorder %s590_s28, %s728_s29  ;;  %p734_p0 = scmp.lt.s32.totalorder %s728_s29, %s728_s29 }
  0x7b   :  { %v319_v47 = vadd.f32 %v317_v42, %v193_v39 }
  0x7c   :  { %p735_p1 = por %p734_p0, %p733_p13 }
  0x7d   :  { %v443_v6 = vadd.f32 %v441_v9, %v319_v47 }
  0x7e   :  { %p736_p2 = pnand %p735_p1, %p729_p12 }
  0x7f   :  { %v567_v50 = vadd.f32 %v565_v33, %v443_v6 }
  0x81   :  { %571 = vst [vmem:[#allocation11 + $0x4] sm:$0xf] %v567_v50 }
  0x82   :  { %739 = shalt.err (!%p736_p2)
}
  0x83   :  { %s740_s7 = scalar_lea.hbm %s1066_s5, 128 }
  0x84   :  { %p741_p3 = scmp.ne.s32.totalorder %s1066_s5, %s740_s7  ;;  %p744_p4 = scmp.lt.u32.totalorder %s740_s7, %s1066_s5 }
  0x86   :  { %p746_p5 = pnand %p744_p4, %p741_p3 }
  0x88   :  { %749 = shalt.err (!%p746_p5)
}
  0x89   :  { %595 = dma.vmem_to_hbm [thread:$0]  %s590_s28, 128, %s1066_s5, [#allocation12], %s765_s0, %s765_s0, %s766_s21  }
  0x8a   :  { %756 = dma.done.wait [#allocation4], 128  }
  0x8b   :  { %757 = vsyncadd [#allocation4], 4294967168 }
  0x8c   :  { %758 = dma.done.wait [#allocation12], 128  }
  0x8d   :  { %759 = vsyncadd [#allocation12], 4294967168 }
  0x8e   :  { %602 = vsyncpa [#allocation3], 1 }
  0x8f   :  { %603 = vsyncpa [#allocation6], 1 }
  0x90   :  { %604 = vsyncpa [#allocation9], 1 }
  0x91   :  { %605 = vsyncpa [#allocation4], 1 }
  0x92   :  { %606 = vsyncpa [#allocation12], 1 }

</bundles_post_ra>
